<compile_context>
chip_gen: v5e
topology: v5e:2x2
jax: 0.10.0
libtpu: 0.0.40
codegen_flags: <defaults>
</compile_context>

<pallas_src>
import jax
import jax.numpy as jnp
from jax.experimental import pallas as pl
from jax.experimental.pallas import tpu as pltpu


def _hbm_copy_kernel(x_hbm, o_hbm, sem):
    # Pure data movement: one contiguous chunk (row i of the (n_blocks, chunk)
    # view) copied HBM -> HBM by the DMA engine.  No VMEM, no vector ops.
    i = pl.program_id(0)
    cp = pltpu.make_async_copy(x_hbm.at[i], o_hbm.at[i], sem.at[0])
    cp.start()
    cp.wait()


def _pick_n_blocks(total_elems: int, itemsize: int) -> int:
    """Number of equal contiguous chunks for the HBM->HBM copy.

    <=1 MiB: a single DMA.  Larger: 2..8 chunks (targeting ~4 MiB each) so the
    'parallel' grid axis can shard across both TensorCores on v7x.  Chunk count
    must divide the element count exactly (otherwise fall back to one DMA — no
    padding is ever introduced).
    """
    total_bytes = total_elems * itemsize
    if total_bytes <= (1 << 20):
        return 1
    target = -(-total_bytes // (4 << 20))       # ceil-div to ~4 MiB chunks
    target = max(2, min(8, target))
    for n in range(target, 1, -1):              # prefer the target, then fewer
        if total_elems % n == 0:
            return n
    for n in range(8, target, -1):              # then any divisor up to 8
        if total_elems % n == 0:
            return n
    return 1


def _pallas_materialize_flat(flat):
    """Identity-copy a flat 1-D array via direct HBM->HBM DMA (no VMEM)."""
    total = flat.shape[0]
    dtype = flat.dtype
    itemsize = jnp.dtype(dtype).itemsize

    n_blocks = _pick_n_blocks(total, itemsize)
    chunk = total // n_blocks
    x2d = jnp.reshape(flat, (n_blocks, chunk))  # metadata-only

    out2d = pl.pallas_call(
        _hbm_copy_kernel,
        out_shape=jax.ShapeDtypeStruct((n_blocks, chunk), dtype),
        grid_spec=pltpu.PrefetchScalarGridSpec(
            num_scalar_prefetch=0,
            grid=(n_blocks,),
            in_specs=[pl.BlockSpec(memory_space=pl.ANY)],
            out_specs=pl.BlockSpec(memory_space=pl.ANY),
            scratch_shapes=[pltpu.SemaphoreType.DMA((1,))],
        ),
        compiler_params=pltpu.CompilerParams(
            dimension_semantics=("parallel",),
        ),
        cost_estimate=pl.CostEstimate(
            flops=0,
            transcendentals=0,
            bytes_accessed=2 * total * itemsize,
        ),
    )(x2d)

    return jnp.reshape(out2d, (total,))


class View:
    """JAX equivalent of the PyTorch View module.

    __init__ receives a single target shape value (int), stored as a 1-tuple,
    exactly like the PyTorch module: self.shape = (shape,).

    forward(x) returns x viewed as that 1-D shape.  By default this is a pure
    metadata reshape (matching torch.view's zero-copy semantics).  Pass
    materialize=True to force an HBM materialization via the Pallas
    HBM->HBM DMA kernel.
    """

    def __init__(self, shape, materialize: bool = False):
        self.shape = (shape,)
        self.materialize = materialize

    def __call__(self, x):
        total = x.size
        tgt = self.shape
        if tgt[0] == -1:
            tgt = (total,)
        # TODO(synk): only 1-D view targets are supported, matching the ported
        # PyTorch module (self.shape is always a 1-tuple).
        assert tgt[0] == total, "View: incompatible shape"

        if not self.materialize:
            # Metadata-only reshape: identical element order to torch.view on
            # a contiguous tensor, zero HBM traffic.
            return jnp.reshape(x, tgt)

        flat = jnp.reshape(x, (total,))
        out_flat = _pallas_materialize_flat(flat)
        return jnp.reshape(out_flat, tgt)


if __name__ == "__main__":
    key = jax.random.PRNGKey(0)

    # Small NCHW input consistent with a GAN-generator-style feature map.
    x = jax.random.normal(key, (2, 4, 16, 16), dtype=jnp.float32)
    total = 2 * 4 * 16 * 16
    ref = jnp.reshape(x, (total,))

    # Fast (metadata-only) path — the default.
    y_fast = jax.block_until_ready(View(total)(x))
    assert y_fast.shape == ref.shape and y_fast.dtype == ref.dtype
    assert bool(jnp.all(y_fast == ref))

    # Pallas-materialized path — single HBM->HBM DMA (small array -> 1 block).
    y_mat = jax.block_until_ready(View(total, materialize=True)(x))
    assert y_mat.shape == ref.shape and y_mat.dtype == ref.dtype
    assert bool(jnp.all(y_mat == ref))

    # Ragged total (not a multiple of 128): no host-side pad/slice passes.
    key, k1 = jax.random.split(key)
    xr = jax.random.normal(k1, (3, 5, 7, 11), dtype=jnp.float32)
    tr = 3 * 5 * 7 * 11
    yr = jax.block_until_ready(View(-1, materialize=True)(xr))
    assert yr.shape == (tr,)
    assert bool(jnp.all(yr == jnp.reshape(xr, (tr,))))

    # >1 MiB input: exercises the multi-chunk "parallel" DMA path (2 chunks).
    key, k2 = jax.random.split(key)
    xl = jax.random.normal(k2, (2, 4, 192, 192), dtype=jnp.float32)
    tl = 2 * 4 * 192 * 192
    yl = jax.block_until_ready(View(tl, materialize=True)(xl))
    assert bool(jnp.all(yl == jnp.reshape(xl, (tl,))))

    print("KERNEL_OK")
</pallas_src>

<mosaic_0001>
module attributes {stable_mosaic.version = 11 : i64} {
  func.func @_hbm_copy_kernel(%arg0: i32, %arg1: memref<1x2048xf32, #tpu.memory_space<any>>, %arg2: memref<1x2048xf32, #tpu.memory_space<any>>, %arg3: memref<1x!tpu.dma_semaphore, #tpu.memory_space<semaphore_mem>>) attributes {dimension_semantics = [#tpu.dimension_semantics<parallel>], iteration_bounds = array<i64: 1>, scalar_prefetch = 0 : i64, scratch_operands = 1 : i64, tpu.core_type = #tpu.core_type<tc>, window_params = [{}, {}]} {
    %c0_i32 = arith.constant 0 : i32
    %c0_i32_0 = arith.constant 0 : i32
    %0 = tpu.memref_slice %arg1[%arg0, %c0_i32_0] : memref<1x2048xf32, #tpu.memory_space<any>> -> memref<1x2048xf32, #tpu.memory_space<any>>
    %1 = tpu.memref_squeeze %0 : memref<1x2048xf32, #tpu.memory_space<any>> -> memref<2048xf32, #tpu.memory_space<any>>
    %c0_i32_1 = arith.constant 0 : i32
    %2 = tpu.memref_slice %arg2[%arg0, %c0_i32_1] : memref<1x2048xf32, #tpu.memory_space<any>> -> memref<1x2048xf32, #tpu.memory_space<any>>
    %3 = tpu.memref_squeeze %2 : memref<1x2048xf32, #tpu.memory_space<any>> -> memref<2048xf32, #tpu.memory_space<any>>
    %4 = tpu.memref_slice %arg3[%c0_i32] : memref<1x!tpu.dma_semaphore, #tpu.memory_space<semaphore_mem>> -> memref<1x!tpu.dma_semaphore, #tpu.memory_space<semaphore_mem>>
    %5 = tpu.memref_squeeze %4 : memref<1x!tpu.dma_semaphore, #tpu.memory_space<semaphore_mem>> -> memref<!tpu.dma_semaphore, #tpu.memory_space<semaphore_mem>>
    tpu.enqueue_dma source(%1 : memref<2048xf32, #tpu.memory_space<any>>) target(%3 : memref<2048xf32, #tpu.memory_space<any>>) target_semaphore(%5 : memref<!tpu.dma_semaphore, #tpu.memory_space<semaphore_mem>>)
    %c0_i32_2 = arith.constant 0 : i32
    %c0_i32_3 = arith.constant 0 : i32
    %6 = tpu.memref_slice %arg1[%arg0, %c0_i32_3] : memref<1x2048xf32, #tpu.memory_space<any>> -> memref<1x2048xf32, #tpu.memory_space<any>>
    %7 = tpu.memref_squeeze %6 : memref<1x2048xf32, #tpu.memory_space<any>> -> memref<2048xf32, #tpu.memory_space<any>>
    %c0_i32_4 = arith.constant 0 : i32
    %8 = tpu.memref_slice %arg2[%arg0, %c0_i32_4] : memref<1x2048xf32, #tpu.memory_space<any>> -> memref<1x2048xf32, #tpu.memory_space<any>>
    %9 = tpu.memref_squeeze %8 : memref<1x2048xf32, #tpu.memory_space<any>> -> memref<2048xf32, #tpu.memory_space<any>>
    %10 = tpu.memref_slice %arg3[%c0_i32_2] : memref<1x!tpu.dma_semaphore, #tpu.memory_space<semaphore_mem>> -> memref<1x!tpu.dma_semaphore, #tpu.memory_space<semaphore_mem>>
    %11 = tpu.memref_squeeze %10 : memref<1x!tpu.dma_semaphore, #tpu.memory_space<semaphore_mem>> -> memref<!tpu.dma_semaphore, #tpu.memory_space<semaphore_mem>>
    tpu.wait_dma2 semaphore(%11 : memref<!tpu.dma_semaphore, #tpu.memory_space<semaphore_mem>>) src(%7 : memref<2048xf32, #tpu.memory_space<any>>) dst(%9 : memref<2048xf32, #tpu.memory_space<any>>)
    return
  }
}

</mosaic_0001>

<bundles_post_ra>
// kernel: tpu_custom_call.1
= control target key start
LH: loop header
LB: loop body
LE: loop exit
PB: predicated region body
PF: predicated region fallthrough
CT: control target
= control target key end

     0   :  { %s34_s12 = smov [#allocation2]   ;;  %s35_s13 = smov [#allocation3]   ;;  %s53_s0 = inlined_call_operand.hbm [shape: f32[1,2048], index: 0, kind: input, shape index: {}]   ;;  %s54_s1 = inlined_call_operand.hbm [shape: f32[1,2048], index: 1, kind: output, shape index: {}]  }
   0x1   :  { %s13_s8 = sshll.u32 %s53_s0, 4  ;;  %s15_s11 = sshll.u32 %s54_s1, 4  ;;  %s14_s8 = int_to_ptr.hbm [resolvable:$true] %s13_s8  ;;  %s16_s11 = int_to_ptr.hbm [resolvable:$true] %s15_s11 }
   0x2   :  { %s36_s14 = smov 0  }
   0x3   :  { %19 = dma.general %s14_s8, 256, %s16_s11, %s34_s12, %s35_s13, [#allocation4], %s36_s14, 0  }
   0x4   :  { %32 = dma.done.wait [#allocation2], 256 }
   0x5   :  { %33 = vsyncadd [#allocation2], 4294967040 }
   0x6   :  { %22 = vsyncmov [#allocation2] }
   0x9   :  { %s23_s15 = vpop.sfrf %22 }
   0xa   :  { %p28_p0 = scmp.ne.s32.totalorder %s23_s15, 0 }
   0xc   :  { %27 = shalt.err (%p28_p0)  }

</bundles_post_ra>
